<compile_context>
chip_gen: v7x
topology: tpu7x:2x2x1
jax: 0.10.0
libtpu: 0.0.40
codegen_flags: <defaults>
</compile_context>

<pallas_src>
import functools
from typing import NamedTuple

import jax
import jax.numpy as jnp
from jax.experimental import pallas as pl
from jax.experimental.pallas import tpu as pltpu

LANE = 128
BF16_SUBLANE = 16


def _round_up(x, m):
    return (x + m - 1) // m * m


# ----------------------------------------------------------------------------
# One-time parameter packing (hoisted out of the per-call launch path).
# ----------------------------------------------------------------------------
class PackedParams(NamedTuple):
    w1: jax.Array       # (D_IN_pad, D1_pad)        bf16, (in, out), zero-padded
    w2: jax.Array       # (D1_pad, D_R_pad)          bf16
    w_rest: jax.Array   # (7, D_R_pad, D_R_pad)      bf16  (fc3..fc9)
    b1: jax.Array       # (1, D1_pad)                f32
    b2: jax.Array       # (1, D_R_pad)               f32
    b_rest: jax.Array   # (7, 1, D_R_pad)            f32


def pack_params(weights, biases, *, param_dtype=jnp.bfloat16):
    """Transpose to (in, out), zero-pad to width-matched lane-aligned slabs."""
    assert len(weights) == 9 and len(biases) == 9
    in_dims = [w.shape[1] for w in weights]
    out_dims = [w.shape[0] for w in weights]
    d_in = _round_up(in_dims[0], LANE)                       # fc1 input width
    d1 = _round_up(out_dims[0], LANE)                        # fc1 output width
    # fc2's output and every fc3..fc9 in/out share one padded width.
    d_r = _round_up(max(out_dims[1:] + in_dims[2:]), LANE)

    def pad_t(w, rows, cols):
        wt = jnp.asarray(w, jnp.float32).T                   # (in, out)
        return jnp.pad(wt, ((0, rows - wt.shape[0]), (0, cols - wt.shape[1])))

    def pad_b(b, cols):
        bb = jnp.asarray(b, jnp.float32).reshape(1, -1)
        return jnp.pad(bb, ((0, 0), (0, cols - bb.shape[1])))

    w1 = pad_t(weights[0], d_in, d1).astype(param_dtype)
    w2 = pad_t(weights[1], d1, d_r).astype(param_dtype)
    w_rest = jnp.stack([pad_t(w, d_r, d_r) for w in weights[2:]]).astype(param_dtype)
    b1 = pad_b(biases[0], d1)
    b2 = pad_b(biases[1], d_r)
    b_rest = jnp.stack([pad_b(b, d_r) for b in biases[2:]])  # (7, 1, d_r)
    return PackedParams(w1=w1, w2=w2, w_rest=w_rest, b1=b1, b2=b2, b_rest=b_rest)


# ----------------------------------------------------------------------------
# Kernel: full 9-layer forward chain on one batch tile.
# ----------------------------------------------------------------------------
def _mlp_kernel(x_ref, w1_ref, w2_ref, wr_ref, b1_ref, b2_ref, br_ref, o_ref):
    # x_ref:  (TM, D_IN)        bf16  (cast + zero-padded in the wrapper)
    # w1_ref: (D_IN, D1)        bf16
    # w2_ref: (D1, D_R)         bf16
    # wr_ref: (7, D_R, D_R)     bf16
    # b1_ref: (1, D1)           f32
    # b2_ref: (1, D_R)          f32
    # br_ref: (7, 1, D_R)       f32
    # o_ref:  (TM, D_R)         f32   (lane-dense; wrapper keeps column 0)
    mxu = w1_ref.dtype
    n_rest = wr_ref.shape[0]          # 7: fc3..fc9

    # fc1 (ReLU). Zero-padded lanes stay exactly zero through the ReLU chain.
    h = jnp.dot(x_ref[...], w1_ref[...], preferred_element_type=jnp.float32)
    h = jnp.maximum(h + b1_ref[...], 0.0)

    # fc2 (ReLU)
    h = jnp.dot(h.astype(mxu), w2_ref[...], preferred_element_type=jnp.float32)
    h = jnp.maximum(h + b2_ref[...], 0.0)

    # fc3..fc8 (ReLU) — static unroll keeps the dependent matmul chain visible.
    for i in range(n_rest - 1):
        h = jnp.dot(h.astype(mxu), wr_ref[i], preferred_element_type=jnp.float32)
        h = jnp.maximum(h + br_ref[i], 0.0)

    # fc9 (Sigmoid): lane-dense store of the full padded block (unmasked vst).
    # Padded columns hold sigmoid(0) = 0.5 and are sliced off in the wrapper.
    h = jnp.dot(h.astype(mxu), wr_ref[n_rest - 1], preferred_element_type=jnp.float32)
    o_ref[...] = jax.nn.sigmoid(h + br_ref[n_rest - 1])


# ----------------------------------------------------------------------------
# Wrapper: batch-tiled pallas_call; params stay VMEM-resident across tiles.
# ----------------------------------------------------------------------------
@functools.partial(jax.jit, static_argnames=("block_batch",))
def feedforward_pallas(x, params: PackedParams, *, block_batch=256):
    B = x.shape[0]
    d_in, d1 = params.w1.shape
    n_rest, d_r, _ = params.w_rest.shape

    # x = x.float(), then bf16 for the MXU (same bits as the old in-kernel cast,
    # half the input HBM->VMEM bytes).
    x = x.astype(jnp.float32).astype(params.w1.dtype)
    if x.shape[1] < d_in:
        x = jnp.pad(x, ((0, 0), (0, d_in - x.shape[1])))

    # Batch tile: multiple of 16 (bf16 sublane pack), capped at block_batch.
    tm = _round_up(min(block_batch, _round_up(B, BF16_SUBLANE)), BF16_SUBLANE)
    # Prefer >= 2 grid tiles when the batch allows so v7x's second TC is used.
    if B >= 2 * BF16_SUBLANE and _round_up(B, tm) // tm < 2:
        tm = _round_up(-(-B // 2), BF16_SUBLANE)
    bp = _round_up(B, tm)
    if bp != B:
        x = jnp.pad(x, ((0, bp - B), (0, 0)))

    out = pl.pallas_call(
        _mlp_kernel,
        out_shape=jax.ShapeDtypeStruct((bp, d_r), jnp.float32),
        grid=(bp // tm,),
        in_specs=[
            pl.BlockSpec((tm, d_in), lambda i: (i, 0)),             # x: batch-tiled
            pl.BlockSpec((d_in, d1), lambda i: (0, 0)),             # w1: resident
            pl.BlockSpec((d1, d_r), lambda i: (0, 0)),              # w2: resident
            pl.BlockSpec((n_rest, d_r, d_r), lambda i: (0, 0, 0)),  # fc3..9: resident
            pl.BlockSpec((1, d1), lambda i: (0, 0)),                # b1
            pl.BlockSpec((1, d_r), lambda i: (0, 0)),               # b2
            pl.BlockSpec((n_rest, 1, d_r), lambda i: (0, 0, 0)),    # b3..b9
        ],
        out_specs=pl.BlockSpec((tm, d_r), lambda i: (i, 0)),        # lane-dense out
        compiler_params=pltpu.CompilerParams(
            dimension_semantics=("parallel",),
        ),
    )(x, params.w1, params.w2, params.w_rest, params.b1, params.b2, params.b_rest)
    return out[:B, :1]


# ----------------------------------------------------------------------------
# Parameter construction + references.
# ----------------------------------------------------------------------------
def make_params(input_size, key):
    """Synthetic parameters with the same shapes as the PyTorch module."""
    dims = [
        input_size,
        input_size // 2,
        input_size // 4,
        input_size // 5,
        input_size // 5,
        input_size // 5,
        input_size // 5,
        input_size // 10,
        input_size // 20,
        1,
    ]
    weights, biases = [], []
    for i in range(len(dims) - 1):
        fan_in, fan_out = dims[i], dims[i + 1]
        key, kw, kb = jax.random.split(key, 3)
        bound = 1.0 / (fan_in ** 0.5)
        weights.append(
            jax.random.uniform(kw, (fan_out, fan_in), jnp.float32, -bound, bound))
        biases.append(
            jax.random.uniform(kb, (fan_out,), jnp.float32, -bound, bound))
    return weights, biases


def reference_forward_f32(x, weights, biases):
    """Pure-JAX f32 reference matching the PyTorch forward exactly."""
    h = x.astype(jnp.float32)
    n = len(weights)
    for i, (w, b) in enumerate(zip(weights, biases)):
        h = h @ jnp.asarray(w, jnp.float32).T + jnp.asarray(b, jnp.float32)
        h = jnp.maximum(h, 0.0) if i < n - 1 else jax.nn.sigmoid(h)
    return h


def reference_forward_mixed(x, weights, biases, compute_dtype=jnp.bfloat16):
    """Pure-JAX reference mirroring the kernel's bf16-MXU / f32-accumulate math."""
    h = x.astype(jnp.float32)
    n = len(weights)
    for i, (w, b) in enumerate(zip(weights, biases)):
        wt = jnp.asarray(w, jnp.float32).T.astype(compute_dtype)
        h = jnp.dot(h.astype(compute_dtype), wt,
                    preferred_element_type=jnp.float32)
        h = h + jnp.asarray(b, jnp.float32)
        h = jnp.maximum(h, 0.0) if i < n - 1 else jax.nn.sigmoid(h)
    return h


if __name__ == "__main__":
    input_size = 320   # divisible by 2, 4, 5, 10, 20
    batch = 32

    key = jax.random.PRNGKey(0)
    key, kx = jax.random.split(key)
    x = jax.random.normal(kx, (batch, input_size), jnp.float32)

    weights, biases = make_params(input_size, key)
    packed = pack_params(weights, biases)          # one-time packing (not per call)

    out = feedforward_pallas(x, packed)
    out = jax.block_until_ready(out)
    assert out.shape == (batch, 1), out.shape

    # Tight check against a pure-JAX reference with identical mixed precision.
    ref_mixed = reference_forward_mixed(x, weights, biases)
    assert jnp.allclose(out, ref_mixed, atol=2e-4, rtol=2e-4), (out, ref_mixed)

    # Semantic check against the full-f32 PyTorch-equivalent forward
    # (tolerance accounts for bf16 weight/activation storage on the MXU path).
    ref_f32 = reference_forward_f32(x, weights, biases)
    assert jnp.allclose(out, ref_f32, atol=3e-2), (out, ref_f32)

    print("KERNEL_OK")
</pallas_src>

<mosaic_0001>
module attributes {stable_mosaic.version = 11 : i64} {
  func.func @_mlp_kernel(%arg0: i32, %arg1: memref<16x384xbf16, #tpu.memory_space<vmem>>, %arg2: memref<384x256xbf16, #tpu.memory_space<vmem>>, %arg3: memref<256x128xbf16, #tpu.memory_space<vmem>>, %arg4: memref<7x128x128xbf16, #tpu.memory_space<vmem>>, %arg5: memref<1x256xf32, #tpu.memory_space<vmem>>, %arg6: memref<1x128xf32, #tpu.memory_space<vmem>>, %arg7: memref<7x1x128xf32, #tpu.memory_space<vmem>>, %arg8: memref<16x128xf32, #tpu.memory_space<vmem>>) attributes {dimension_semantics = [#tpu.dimension_semantics<parallel>], iteration_bounds = array<i64: 2>, scalar_prefetch = 0 : i64, scratch_operands = 0 : i64, tpu.core_type = #tpu.core_type<tc>, window_params = [{transform_indices = @transform_0, window_bounds = array<i64: 16, 384>}, {pipeline_mode = #tpu.pipeline_mode<synchronous>, transform_indices = @transform_1, window_bounds = array<i64: 384, 256>}, {pipeline_mode = #tpu.pipeline_mode<synchronous>, transform_indices = @transform_2, window_bounds = array<i64: 256, 128>}, {pipeline_mode = #tpu.pipeline_mode<synchronous>, transform_indices = @transform_3, window_bounds = array<i64: 7, 128, 128>}, {pipeline_mode = #tpu.pipeline_mode<synchronous>, transform_indices = @transform_4, window_bounds = array<i64: 1, 256>}, {pipeline_mode = #tpu.pipeline_mode<synchronous>, transform_indices = @transform_5, window_bounds = array<i64: 1, 128>}, {pipeline_mode = #tpu.pipeline_mode<synchronous>, transform_indices = @transform_6, window_bounds = array<i64: 7, 1, 128>}, {transform_indices = @transform_7, window_bounds = array<i64: 16, 128>}]} {
    %c0 = arith.constant 0 : index
    %c0_0 = arith.constant 0 : index
    %0 = vector.load %arg1[%c0, %c0_0] : memref<16x384xbf16, #tpu.memory_space<vmem>>, vector<16x384xbf16>
    %c0_1 = arith.constant 0 : index
    %c0_2 = arith.constant 0 : index
    %1 = vector.load %arg2[%c0_1, %c0_2] : memref<384x256xbf16, #tpu.memory_space<vmem>>, vector<384x256xbf16>
    %cst = arith.constant dense<0.000000e+00> : vector<16x256xf32>
    %2 = tpu.matmul %0, %1, %cst {dimension_numbers = #tpu.dot_dimension_numbers<[1], [0], [0], [1], [0, 0, 1, 1], [], []>} : vector<16x384xbf16>, vector<384x256xbf16>, vector<16x256xf32> -> vector<16x256xf32>
    %c0_3 = arith.constant 0 : index
    %c0_4 = arith.constant 0 : index
    %3 = vector.load %arg5[%c0_3, %c0_4] : memref<1x256xf32, #tpu.memory_space<vmem>>, vector<1x256xf32>
    %4 = vector.broadcast %3 : vector<1x256xf32> to vector<16x256xf32>
    %5 = arith.addf %2, %4 : vector<16x256xf32>
    %cst_5 = arith.constant 0.000000e+00 : f32
    %6 = vector.broadcast %cst_5 : f32 to vector<16x256xf32>
    %7 = arith.maximumf %5, %6 : vector<16x256xf32>
    %8 = arith.truncf %7 : vector<16x256xf32> to vector<16x256xbf16>
    %c0_6 = arith.constant 0 : index
    %c0_7 = arith.constant 0 : index
    %9 = vector.load %arg3[%c0_6, %c0_7] : memref<256x128xbf16, #tpu.memory_space<vmem>>, vector<256x128xbf16>
    %cst_8 = arith.constant dense<0.000000e+00> : vector<16x128xf32>
    %10 = tpu.matmul %8, %9, %cst_8 {dimension_numbers = #tpu.dot_dimension_numbers<[1], [0], [0], [1], [0, 0, 1, 1], [], []>} : vector<16x256xbf16>, vector<256x128xbf16>, vector<16x128xf32> -> vector<16x128xf32>
    %c0_9 = arith.constant 0 : index
    %c0_10 = arith.constant 0 : index
    %11 = vector.load %arg6[%c0_9, %c0_10] : memref<1x128xf32, #tpu.memory_space<vmem>>, vector<1x128xf32>
    %12 = vector.broadcast %11 : vector<1x128xf32> to vector<16x128xf32>
    %13 = arith.addf %10, %12 : vector<16x128xf32>
    %cst_11 = arith.constant 0.000000e+00 : f32
    %14 = vector.broadcast %cst_11 : f32 to vector<16x128xf32>
    %15 = arith.maximumf %13, %14 : vector<16x128xf32>
    %16 = arith.truncf %15 : vector<16x128xf32> to vector<16x128xbf16>
    %c0_12 = arith.constant 0 : index
    %c0_13 = arith.constant 0 : index
    %c0_14 = arith.constant 0 : index
    %17 = vector.load %arg4[%c0_12, %c0_13, %c0_14] : memref<7x128x128xbf16, #tpu.memory_space<vmem>>, vector<1x128x128xbf16>
    %18 = vector.shape_cast %17 : vector<1x128x128xbf16> to vector<128x128xbf16>
    %cst_15 = arith.constant dense<0.000000e+00> : vector<16x128xf32>
    %19 = tpu.matmul %16, %18, %cst_15 {dimension_numbers = #tpu.dot_dimension_numbers<[1], [0], [0], [1], [0, 0, 1, 1], [], []>} : vector<16x128xbf16>, vector<128x128xbf16>, vector<16x128xf32> -> vector<16x128xf32>
    %c0_16 = arith.constant 0 : index
    %c0_17 = arith.constant 0 : index
    %c0_18 = arith.constant 0 : index
    %20 = vector.load %arg7[%c0_16, %c0_17, %c0_18] : memref<7x1x128xf32, #tpu.memory_space<vmem>>, vector<1x1x128xf32>
    %21 = vector.shape_cast %20 : vector<1x1x128xf32> to vector<1x128xf32>
    %22 = vector.broadcast %21 : vector<1x128xf32> to vector<16x128xf32>
    %23 = arith.addf %19, %22 : vector<16x128xf32>
    %cst_19 = arith.constant 0.000000e+00 : f32
    %24 = vector.broadcast %cst_19 : f32 to vector<16x128xf32>
    %25 = arith.maximumf %23, %24 : vector<16x128xf32>
    %26 = arith.truncf %25 : vector<16x128xf32> to vector<16x128xbf16>
    %c1 = arith.constant 1 : index
    %c0_20 = arith.constant 0 : index
    %c0_21 = arith.constant 0 : index
    %27 = vector.load %arg4[%c1, %c0_20, %c0_21] : memref<7x128x128xbf16, #tpu.memory_space<vmem>>, vector<1x128x128xbf16>
    %28 = vector.shape_cast %27 : vector<1x128x128xbf16> to vector<128x128xbf16>
    %cst_22 = arith.constant dense<0.000000e+00> : vector<16x128xf32>
    %29 = tpu.matmul %26, %28, %cst_22 {dimension_numbers = #tpu.dot_dimension_numbers<[1], [0], [0], [1], [0, 0, 1, 1], [], []>} : vector<16x128xbf16>, vector<128x128xbf16>, vector<16x128xf32> -> vector<16x128xf32>
    %c1_23 = arith.constant 1 : index
    %c0_24 = arith.constant 0 : index
    %c0_25 = arith.constant 0 : index
    %30 = vector.load %arg7[%c1_23, %c0_24, %c0_25] : memref<7x1x128xf32, #tpu.memory_space<vmem>>, vector<1x1x128xf32>
    %31 = vector.shape_cast %30 : vector<1x1x128xf32> to vector<1x128xf32>
    %32 = vector.broadcast %31 : vector<1x128xf32> to vector<16x128xf32>
    %33 = arith.addf %29, %32 : vector<16x128xf32>
    %cst_26 = arith.constant 0.000000e+00 : f32
    %34 = vector.broadcast %cst_26 : f32 to vector<16x128xf32>
    %35 = arith.maximumf %33, %34 : vector<16x128xf32>
    %36 = arith.truncf %35 : vector<16x128xf32> to vector<16x128xbf16>
    %c2 = arith.constant 2 : index
    %c0_27 = arith.constant 0 : index
    %c0_28 = arith.constant 0 : index
    %37 = vector.load %arg4[%c2, %c0_27, %c0_28] : memref<7x128x128xbf16, #tpu.memory_space<vmem>>, vector<1x128x128xbf16>
    %38 = vector.shape_cast %37 : vector<1x128x128xbf16> to vector<128x128xbf16>
    %cst_29 = arith.constant dense<0.000000e+00> : vector<16x128xf32>
    %39 = tpu.matmul %36, %38, %cst_29 {dimension_numbers = #tpu.dot_dimension_numbers<[1], [0], [0], [1], [0, 0, 1, 1], [], []>} : vector<16x128xbf16>, vector<128x128xbf16>, vector<16x128xf32> -> vector<16x128xf32>
    %c2_30 = arith.constant 2 : index
    %c0_31 = arith.constant 0 : index
    %c0_32 = arith.constant 0 : index
    %40 = vector.load %arg7[%c2_30, %c0_31, %c0_32] : memref<7x1x128xf32, #tpu.memory_space<vmem>>, vector<1x1x128xf32>
    %41 = vector.shape_cast %40 : vector<1x1x128xf32> to vector<1x128xf32>
    %42 = vector.broadcast %41 : vector<1x128xf32> to vector<16x128xf32>
    %43 = arith.addf %39, %42 : vector<16x128xf32>
    %cst_33 = arith.constant 0.000000e+00 : f32
    %44 = vector.broadcast %cst_33 : f32 to vector<16x128xf32>
    %45 = arith.maximumf %43, %44 : vector<16x128xf32>
    %46 = arith.truncf %45 : vector<16x128xf32> to vector<16x128xbf16>
    %c3 = arith.constant 3 : index
    %c0_34 = arith.constant 0 : index
    %c0_35 = arith.constant 0 : index
    %47 = vector.load %arg4[%c3, %c0_34, %c0_35] : memref<7x128x128xbf16, #tpu.memory_space<vmem>>, vector<1x128x128xbf16>
    %48 = vector.shape_cast %47 : vector<1x128x128xbf16> to vector<128x128xbf16>
    %cst_36 = arith.constant dense<0.000000e+00> : vector<16x128xf32>
    %49 = tpu.matmul %46, %48, %cst_36 {dimension_numbers = #tpu.dot_dimension_numbers<[1], [0], [0], [1], [0, 0, 1, 1], [], []>} : vector<16x128xbf16>, vector<128x128xbf16>, vector<16x128xf32> -> vector<16x128xf32>
    %c3_37 = arith.constant 3 : index
    %c0_38 = arith.constant 0 : index
    %c0_39 = arith.constant 0 : index
    %50 = vector.load %arg7[%c3_37, %c0_38, %c0_39] : memref<7x1x128xf32, #tpu.memory_space<vmem>>, vector<1x1x128xf32>
    %51 = vector.shape_cast %50 : vector<1x1x128xf32> to vector<1x128xf32>
    %52 = vector.broadcast %51 : vector<1x128xf32> to vector<16x128xf32>
    %53 = arith.addf %49, %52 : vector<16x128xf32>
    %cst_40 = arith.constant 0.000000e+00 : f32
    %54 = vector.broadcast %cst_40 : f32 to vector<16x128xf32>
    %55 = arith.maximumf %53, %54 : vector<16x128xf32>
    %56 = arith.truncf %55 : vector<16x128xf32> to vector<16x128xbf16>
    %c4 = arith.constant 4 : index
    %c0_41 = arith.constant 0 : index
    %c0_42 = arith.constant 0 : index
    %57 = vector.load %arg4[%c4, %c0_41, %c0_42] : memref<7x128x128xbf16, #tpu.memory_space<vmem>>, vector<1x128x128xbf16>
    %58 = vector.shape_cast %57 : vector<1x128x128xbf16> to vector<128x128xbf16>
    %cst_43 = arith.constant dense<0.000000e+00> : vector<16x128xf32>
    %59 = tpu.matmul %56, %58, %cst_43 {dimension_numbers = #tpu.dot_dimension_numbers<[1], [0], [0], [1], [0, 0, 1, 1], [], []>} : vector<16x128xbf16>, vector<128x128xbf16>, vector<16x128xf32> -> vector<16x128xf32>
    %c4_44 = arith.constant 4 : index
    %c0_45 = arith.constant 0 : index
    %c0_46 = arith.constant 0 : index
    %60 = vector.load %arg7[%c4_44, %c0_45, %c0_46] : memref<7x1x128xf32, #tpu.memory_space<vmem>>, vector<1x1x128xf32>
    %61 = vector.shape_cast %60 : vector<1x1x128xf32> to vector<1x128xf32>
    %62 = vector.broadcast %61 : vector<1x128xf32> to vector<16x128xf32>
    %63 = arith.addf %59, %62 : vector<16x128xf32>
    %cst_47 = arith.constant 0.000000e+00 : f32
    %64 = vector.broadcast %cst_47 : f32 to vector<16x128xf32>
    %65 = arith.maximumf %63, %64 : vector<16x128xf32>
    %66 = arith.truncf %65 : vector<16x128xf32> to vector<16x128xbf16>
    %c5 = arith.constant 5 : index
    %c0_48 = arith.constant 0 : index
    %c0_49 = arith.constant 0 : index
    %67 = vector.load %arg4[%c5, %c0_48, %c0_49] : memref<7x128x128xbf16, #tpu.memory_space<vmem>>, vector<1x128x128xbf16>
    %68 = vector.shape_cast %67 : vector<1x128x128xbf16> to vector<128x128xbf16>
    %cst_50 = arith.constant dense<0.000000e+00> : vector<16x128xf32>
    %69 = tpu.matmul %66, %68, %cst_50 {dimension_numbers = #tpu.dot_dimension_numbers<[1], [0], [0], [1], [0, 0, 1, 1], [], []>} : vector<16x128xbf16>, vector<128x128xbf16>, vector<16x128xf32> -> vector<16x128xf32>
    %c5_51 = arith.constant 5 : index
    %c0_52 = arith.constant 0 : index
    %c0_53 = arith.constant 0 : index
    %70 = vector.load %arg7[%c5_51, %c0_52, %c0_53] : memref<7x1x128xf32, #tpu.memory_space<vmem>>, vector<1x1x128xf32>
    %71 = vector.shape_cast %70 : vector<1x1x128xf32> to vector<1x128xf32>
    %72 = vector.broadcast %71 : vector<1x128xf32> to vector<16x128xf32>
    %73 = arith.addf %69, %72 : vector<16x128xf32>
    %cst_54 = arith.constant 0.000000e+00 : f32
    %74 = vector.broadcast %cst_54 : f32 to vector<16x128xf32>
    %75 = arith.maximumf %73, %74 : vector<16x128xf32>
    %76 = arith.truncf %75 : vector<16x128xf32> to vector<16x128xbf16>
    %c6 = arith.constant 6 : index
    %c0_55 = arith.constant 0 : index
    %c0_56 = arith.constant 0 : index
    %77 = vector.load %arg4[%c6, %c0_55, %c0_56] : memref<7x128x128xbf16, #tpu.memory_space<vmem>>, vector<1x128x128xbf16>
    %78 = vector.shape_cast %77 : vector<1x128x128xbf16> to vector<128x128xbf16>
    %cst_57 = arith.constant dense<0.000000e+00> : vector<16x128xf32>
    %79 = tpu.matmul %76, %78, %cst_57 {dimension_numbers = #tpu.dot_dimension_numbers<[1], [0], [0], [1], [0, 0, 1, 1], [], []>} : vector<16x128xbf16>, vector<128x128xbf16>, vector<16x128xf32> -> vector<16x128xf32>
    %c6_58 = arith.constant 6 : index
    %c0_59 = arith.constant 0 : index
    %c0_60 = arith.constant 0 : index
    %80 = vector.load %arg7[%c6_58, %c0_59, %c0_60] : memref<7x1x128xf32, #tpu.memory_space<vmem>>, vector<1x1x128xf32>
    %81 = vector.shape_cast %80 : vector<1x1x128xf32> to vector<1x128xf32>
    %82 = vector.broadcast %81 : vector<1x128xf32> to vector<16x128xf32>
    %83 = arith.addf %79, %82 : vector<16x128xf32>
    %84 = arith.negf %83 : vector<16x128xf32>
    %85 = math.exp %84 : vector<16x128xf32>
    %cst_61 = arith.constant 1.000000e+00 : f32
    %86 = vector.broadcast %cst_61 : f32 to vector<16x128xf32>
    %87 = arith.addf %86, %85 : vector<16x128xf32>
    %88 = arith.divf %86, %87 : vector<16x128xf32>
    %c0_62 = arith.constant 0 : index
    %c0_63 = arith.constant 0 : index
    %89 = vector.load %arg8[%c0_62, %c0_63] : memref<16x128xf32, #tpu.memory_space<vmem>>, vector<16x128xf32>
    tpu.vector_store %arg8[%c0_62, %c0_63], %88 {strides = array<i32>} : memref<16x128xf32, #tpu.memory_space<vmem>>, vector<16x128xf32>,
    return
  }
  func.func @transform_0(%arg0: i32) -> (i32, i32) {
    %c0_i32 = arith.constant 0 : i32
    %c0_i32_0 = arith.constant 0 : i32
    return %arg0, %c0_i32 : i32, i32
  }
  func.func @transform_1(%arg0: i32) -> (i32, i32) {
    %c0_i32 = arith.constant 0 : i32
    %c0_i32_0 = arith.constant 0 : i32
    %c0_i32_1 = arith.constant 0 : i32
    return %c0_i32, %c0_i32_0 : i32, i32
  }
  func.func @transform_2(%arg0: i32) -> (i32, i32) {
    %c0_i32 = arith.constant 0 : i32
    %c0_i32_0 = arith.constant 0 : i32
    %c0_i32_1 = arith.constant 0 : i32
    return %c0_i32, %c0_i32_0 : i32, i32
  }
  func.func @transform_3(%arg0: i32) -> (i32, i32, i32) {
    %c0_i32 = arith.constant 0 : i32
    %c0_i32_0 = arith.constant 0 : i32
    %c0_i32_1 = arith.constant 0 : i32
    %c0_i32_2 = arith.constant 0 : i32
    return %c0_i32, %c0_i32_0, %c0_i32_1 : i32, i32, i32
  }
  func.func @transform_4(%arg0: i32) -> (i32, i32) {
    %c0_i32 = arith.constant 0 : i32
    %c0_i32_0 = arith.constant 0 : i32
    %c0_i32_1 = arith.constant 0 : i32
    return %c0_i32, %c0_i32_0 : i32, i32
  }
  func.func @transform_5(%arg0: i32) -> (i32, i32) {
    %c0_i32 = arith.constant 0 : i32
    %c0_i32_0 = arith.constant 0 : i32
    %c0_i32_1 = arith.constant 0 : i32
    return %c0_i32, %c0_i32_0 : i32, i32
  }
  func.func @transform_6(%arg0: i32) -> (i32, i32, i32) {
    %c0_i32 = arith.constant 0 : i32
    %c0_i32_0 = arith.constant 0 : i32
    %c0_i32_1 = arith.constant 0 : i32
    %c0_i32_2 = arith.constant 0 : i32
    return %c0_i32, %c0_i32_0, %c0_i32_1 : i32, i32, i32
  }
  func.func @transform_7(%arg0: i32) -> (i32, i32) {
    %c0_i32 = arith.constant 0 : i32
    %c0_i32_0 = arith.constant 0 : i32
    return %arg0, %c0_i32 : i32, i32
  }
}

</mosaic_0001>

<bundles_post_ra>
// kernel: feedforward_pallas.1
= control target key start
LH: loop header
LB: loop body
LE: loop exit
PB: predicated region body
PF: predicated region fallthrough
CT: control target
= control target key end

     0   :  { %12 = vsyncpa [#allocation3], 0  ;;  %s2764_s0 = inlined_call_operand.vmem [shape: bf16[32,384], index: 0, kind: input, shape index: {}]   ;;  %s2765_s1 = inlined_call_operand.hbm [shape: bf16[384,256], index: 1, kind: input, shape index: {}]   ;;  %s2766_s2 = inlined_call_operand.vmem [shape: bf16[256,128], index: 2, kind: input, shape index: {}]   ;;  %s2767_s3 = inlined_call_operand.hbm [shape: bf16[7,128,128], index: 3, kind: input, shape index: {}]   ;;  %s2768_s4 = inlined_call_operand.vmem [shape: f32[1,256], index: 4, kind: input, shape index: {}]   ;;  %s2769_s5 = inlined_call_operand.vmem [shape: f32[1,128], index: 5, kind: input, shape index: {}]   ;;  %s2770_s6 = inlined_call_operand.vmem [shape: f32[7,1,128], index: 6, kind: input, shape index: {}]   ;;  %s2771_s7 = inlined_call_operand.vmem [shape: f32[32,128], index: 7, kind: output, shape index: {}]  }
   0x1   :  { %13 = vsyncpa [#allocation5], 0  ;;  %s2514_s24 = smov 0  }
   0x2 LB: > { %s2465_s25 = smov [#allocation2]   ;;  %s1813_s27 = sadd.s32 4294967295, %s2463_s24   ;;  %s2463_s24 = sphi %s2514_s24, %s19_s24  }
   0x3   : > { %s214_s26 = sshll.u32 %s2465_s25, 4  ;;  %p1815_p0 = scmp.ge.s32.totalorder %s2463_s24, 1  ;;  %s215_s26 = int_to_ptr.vmem [resolvable:$true] %s214_s26 }
   0x4   : > { %p202_p1 = scmp.lt.s32.totalorder %s2463_s24, 3  ;;  %p2528_p3 = scmp.eq.s32.totalorder %s1813_s27, 0 }
   0x5   : > { %s2466_s30 = smov [#allocation4]   ;;  %s2393_s12 = scalar_lea.hbm %s2765_s1, 6144 }
   0x6   : > { %p2522_p2 = pnand %p1815_p0, %p202_p1  ;;  %s230_s8 = sshll.u32 %s2466_s30, 4  ;;  %s2540_s8 = int_to_ptr.vmem [resolvable:$true] %s230_s8 }
   0x7   : > { %s2776_s29 = scalar_select %p2528_p3, 1, 0 }
   0x8   : > { %s2775_s28 = scalar_select %p2522_p2, 1, 0 }
   0x9   : > { %p2209_p4 = pneg %p2522_p2  ;;  %p2394_p6 = scmp.ne.s32.totalorder %s2765_s1, %s2393_s12 }
   0xa   : > { %p2400_p10 = scmp.lt.u32.totalorder %s2393_s12, %s2765_s1 }
   0xb   : > { %p2536_p5 = pnand %p2528_p3, %p2209_p4 }
   0xd   : > { %p2395_p7 = pneg %p2536_p5 }
   0xf   : > { %p2396_p8 = pnand %p2395_p7, %p2394_p6 }
  0x11   : > { %p2397_p9 = pneg %p2396_p8 }
  0x13   : > { %p2402_p11 = pnand %p2400_p10, %p2397_p9 }
  0x15   : > { %2405 = shalt.err (!%p2402_p11)
}
  0x16   : > { %s2406_s17 = scalar_lea.vmem %s215_s26, 6144  ;;  %p2414_p1 = scmp.lt.s32.totalorder %s215_s26, %s215_s26 }
  0x17   : > { %p2407_p12 = scmp.ne.s32.totalorder %s215_s26, %s2406_s17  ;;  %p2415_p4 = scmp.lt.s32.totalorder %s2406_s17, %s2406_s17 }
  0x19   : > { %p2409_p13 = pnand %p2407_p12, %p2395_p7  ;;  %p2416_p3 = por %p2415_p4, %p2414_p1 }
  0x1b   : > { %p2410_p0 = pneg %p2409_p13 }
  0x1d   : > { %p2417_p2 = pnand %p2416_p3, %p2410_p0 }
  0x1f   : > { %2420 = shalt.err (!%p2417_p2)
}
  0x20   : > { %s2467_s18 = smov 128   ;;  %s2468_s19 = smov 8  }
  0x21   : > { %2212 = dma.hbm_to_vmem [thread:$0]  (!%p2536_p5), %s2765_s1, 6144, %s215_s26, [#allocation3], %s2467_s18, %s2467_s18, %s2468_s19  }
  0x22   : > { %s2421_s25 = scalar_lea.hbm %s2767_s3, 7168 }
  0x23   : > { %p2422_p6 = scmp.ne.s32.totalorder %s2767_s3, %s2421_s25  ;;  %p2428_p8 = scmp.lt.u32.totalorder %s2421_s25, %s2767_s3 }
  0x25   : > { %p2424_p2 = pnand %p2422_p6, %p2395_p7 }
  0x27   : > { %p2425_p3 = pneg %p2424_p2 }
  0x29   : > { %p2430_p9 = pnand %p2428_p8, %p2425_p3 }
  0x2b   : > { %2433 = shalt.err (!%p2430_p9)
}
  0x2c   : > { %s2434_s26 = scalar_lea.vmem %s2540_s8, 7168  ;;  %p2442_p13 = scmp.lt.s32.totalorder %s2540_s8, %s2540_s8 }
  0x2d   : > { %p2435_p10 = scmp.ne.s32.totalorder %s2540_s8, %s2434_s26  ;;  %p2443_p0 = scmp.lt.s32.totalorder %s2434_s26, %s2434_s26 }
  0x2f   : > { %p2437_p11 = pnand %p2435_p10, %p2395_p7  ;;  %p2444_p1 = por %p2443_p0, %p2442_p13 }
  0x31   : > { %p2438_p12 = pneg %p2437_p11 }
  0x33   : > { %p2445_p4 = pnand %p2444_p1, %p2438_p12 }
  0x35   : > { %2448 = shalt.err (!%p2445_p4)
}
  0x36   : > { %s2469_s13 = smov 64   ;;  %s2470_s14 = smov 4  }
  0x37   : > { %2215 = dma.hbm_to_vmem [thread:$0]  (!%p2536_p5), %s2767_s3, 7168, %s2540_s8, [#allocation5], %s2469_s13, %s2469_s13, %s2470_s14  }
  0x38   : > { %p2778_p6 = scmp.ne.s32.totalorder %s2775_s28, 0 }
  0x39   : > { %p2779_p7 = scmp.ne.s32.totalorder (!%p2778_p6), %s2776_s29, 0 }
  0x3a   : > { %265 = sbr.rel (%p2778_p6) target bundleno = 2173 (0x87d), region = 48 }
  0x41   : > { %2454 = dma.done.wait (%p2779_p7), [#allocation3], 6144  }
  0x42   : > { %2456 = vsyncadd (%p2779_p7), [#allocation3], 4294961152 }
  0x43   : > { %2458 = dma.done.wait (%p2779_p7), [#allocation5], 7168  }
  0x44   : > { %2460 = vsyncadd (%p2779_p7), [#allocation5], 4294960128  ;;  %v2237_v0 = vld [vmem:[#allocation2 + $0x4] ss:$8 sps:$4 sm:$0xff]   ;;  %v2239_v1 = vld [vmem:[#allocation2] ss:$8 sps:$4 sm:$0xff]  }
  0x45   : > { %636 = vmatprep.subr.bf16.mxu0 %v2237_v0  ;;  %v2240_v2 = vld [vmem:[#allocation2 + $0x14] ss:$8 sps:$4 sm:$0xff]   ;;  %v2242_v3 = vld [vmem:[#allocation2 + $0x10] ss:$8 sps:$4 sm:$0xff]   ;;  %v2243_v4 = vld [vmem:[#allocation2 + $0x24] ss:$8 sps:$4 sm:$0xff]  }
  0x46   : > { %637 = vmatpush1.bf16.msra.mxu0 %v2239_v1  ;;  %s1822_s28 = sshll.u32 %s1813_s27, 1  ;;  %v2245_v5 = vld [vmem:[#allocation2 + $0x20] ss:$8 sps:$4 sm:$0xff]   ;;  %v2246_v6 = vld [vmem:[#allocation2 + $0x34] ss:$8 sps:$4 sm:$0xff]   ;;  %v2471_v50 = vmov 0  }
  0x47   : > { %638 = vmatprep.subr.bf16.mxu0 %v2240_v2  ;;  %p303_p5 = scmp.lt.s32.totalorder %s1822_s28, 3  ;;  %v2248_v7 = vld [vmem:[#allocation2 + $0x30] ss:$8 sps:$4 sm:$0xff]   ;;  %v2249_v8 = vld [vmem:[#allocation2 + $0x44] ss:$8 sps:$4 sm:$0xff]   ;;  %vm2473_vm0 = vmmov 0  }
  0x48   : > { %v2251_v9 = vld [vmem:[#allocation2 + $0x40] ss:$8 sps:$4 sm:$0xff]   ;;  %v2252_v10 = vld [vmem:[#allocation2 + $0x54] ss:$8 sps:$4 sm:$0xff]   ;;  %v2254_v11 = vld [vmem:[#allocation2 + $0x50] ss:$8 sps:$4 sm:$0xff]  }
  0x49   : > { %s2781_s28 = smov (!%p303_p5, %s1822_s28), 3  ;;  %v2255_v12 = vld [vmem:[#allocation2 + $0x64] ss:$8 sps:$4 sm:$0xff]   ;;  %v2257_v14 = vld [vmem:[#allocation2 + $0x60] ss:$8 sps:$4 sm:$0xff]   ;;  %v2317_v27 = vld [vmem:[%s2766_s2 + $0x50] sm:$0xff]  }
  0x4a   : > { %639 = vmatpush1.bf16.msra.mxu0 %v2242_v3  ;;  %s2200_s29 = smul.u32 12, %s2781_s28  ;;  %v2258_v15 = vld [vmem:[#allocation2 + $0x74] ss:$8 sps:$4 sm:$0xff]   ;;  %v2260_v16 = vld [vmem:[#allocation2 + $0x70] ss:$8 sps:$4 sm:$0xff]   ;;  %v2313_v22 = vld [vmem:[%s2766_s2 + $0x40] sm:$0xff]  }
  0x4b   : > { %640 = vmatprep.subr.bf16.mxu0 %v2243_v4  ;;  %v2261_v17 = vld [vmem:[#allocation2 + $0x84] ss:$8 sps:$4 sm:$0xff]   ;;  %v2263_v18 = vld [vmem:[#allocation2 + $0x80] ss:$8 sps:$4 sm:$0xff]   ;;  %v2264_v19 = vld [vmem:[#allocation2 + $0x94] ss:$8 sps:$4 sm:$0xff]   ;;  %1967 = vmatprep.subr.bf16.mxu1 %v2313_v22 }
  0x4c   : > { %s2607_s9 = scalar_lea.vmem %s2764_s0, %s2200_s29  ;;  %v2266_v20 = vld [vmem:[#allocation2 + $0x90] ss:$8 sps:$4 sm:$0xff]   ;;  %v2267_v21 = vld [vmem:[#allocation2 + $0xa4] ss:$8 sps:$4 sm:$0xff]   ;;  %v2269_v24 = vld [vmem:[#allocation2 + $0xa0] ss:$8 sps:$4 sm:$0xff]  }
  0x4d   : > { %v2287_v13 = vld [vmem:[%s2607_s9 + $0x4] ss:$12 sps:$4 sm:$0xff]   ;;  %v2315_v25 = vld [vmem:[%s2766_s2 + $0x48] sm:$0xff]   ;;  %v2270_v28 = vld [vmem:[#allocation2 + $0xb4] ss:$8 sps:$4 sm:$0xff]   ;;  %v2472_v4 = vmov 0.0  }
  0x4e   : > { %641 = vmatpush1.bf16.msra.mxu0 %v2245_v5  ;;  %668 = vmatprep.mubr.bf16.mxu0 %v2287_v13  ;;  %v2314_v23 = vld [vmem:[%s2766_s2] sm:$0xff]   ;;  %v2316_v26 = vld [vmem:[%s2766_s2 + $0x8] sm:$0xff]   ;;  %v2272_v29 = vld [vmem:[#allocation2 + $0xb0] ss:$8 sps:$4 sm:$0xff]   ;;  %v370_v5 = vlaneseq  ;;  %s1825_s10 = sshll.u32 %s2781_s28, 3 }
  0x4f   : > { %642 = vmatprep.subr.bf16.mxu0 %v2246_v6  ;;  %1968 = vmatpush3.bf16.msra.mxu1 %v2314_v23  ;;  %v2318_v30 = vld [vmem:[%s2766_s2 + $0x10] sm:$0xff]   ;;  %v2319_v31 = vld [vmem:[%s2766_s2 + $0x58] sm:$0xff]   ;;  %v2273_v32 = vld [vmem:[#allocation2 + $0xc4] ss:$8 sps:$4 sm:$0xff]   ;;  %s313_s12 = scalar_lea.vmem %s2771_s7, %s1825_s10 }
  0x50   : > { %1969 = vmatprep.subr.bf16.mxu1 %v2315_v25  ;;  %v2275_v33 = vld [vmem:[#allocation2 + $0xc0] ss:$8 sps:$4 sm:$0xff]   ;;  %v2320_v34 = vld [vmem:[%s2766_s2 + $0x18] sm:$0xff]   ;;  %v2279_v40 = vld [vmem:[#allocation2 + $0xe4] ss:$8 sps:$4 sm:$0xff]   ;;  %v371_v6 = vshrl.u32 %v370_v5, 7 }
  0x51   : > { %v2321_v35 = vld [vmem:[%s2766_s2 + $0x60] sm:$0xff]   ;;  %v2276_v36 = vld [vmem:[#allocation2 + $0xd4] ss:$8 sps:$4 sm:$0xff]   ;;  %v2278_v38 = vld [vmem:[#allocation2 + $0xd0] ss:$8 sps:$4 sm:$0xff]  }
  0x52   : > { %643 = vmatpush1.bf16.msra.mxu0 %v2248_v7  ;;  %v2322_v37 = vld [vmem:[%s2766_s2 + $0x20] sm:$0xff]   ;;  %v2323_v39 = vld [vmem:[%s2766_s2 + $0x68] sm:$0xff]   ;;  %v2282_v42 = vld [vmem:[#allocation2 + $0xf4] ss:$8 sps:$4 sm:$0xff]   ;;  %v372_v7 = vsub.s32 0, %v371_v6 }
  0x53   : > { %644 = vmatprep.subr.bf16.mxu0 %v2249_v8  ;;  %1970 = vmatpush3.bf16.msra.mxu1 %v2316_v26  ;;  %v2281_v41 = vld [vmem:[#allocation2 + $0xe0] ss:$8 sps:$4 sm:$0xff]   ;;  %v2284_v43 = vld [vmem:[#allocation2 + $0xf0] ss:$8 sps:$4 sm:$0xff]   ;;  %v2290_v44 = vld [vmem:[#allocation2 + $0x104] ss:$8 sps:$4 sm:$0xff]  }
  0x54   : > { %1971 = vmatprep.subr.bf16.mxu1 %v2317_v27  ;;  %v2285_v45 = vld [vmem:[%s2607_s9] ss:$12 sps:$4 sm:$0xff]   ;;  %v2293_v47 = vld [vmem:[#allocation2 + $0x114] ss:$8 sps:$4 sm:$0xff]   ;;  %v2291_v48 = vld [vmem:[#allocation2 + $0x110] ss:$8 sps:$4 sm:$0xff]  }
  0x55   : > { %v2288_v46 = vld [vmem:[#allocation2 + $0x100] ss:$8 sps:$4 sm:$0xff]   ;;  %v2296_v49 = vld [vmem:[#allocation2 + $0x124] ss:$8 sps:$4 sm:$0xff]   ;;  %v2299_v52 = vld [vmem:[#allocation2 + $0x134] ss:$8 sps:$4 sm:$0xff]  }
  0x56   : > { %645 = vmatpush1.bf16.msra.mxu0 %v2251_v9  ;;  %v2294_v51 = vld [vmem:[#allocation2 + $0x120] ss:$8 sps:$4 sm:$0xff]   ;;  %v2297_v53 = vld [vmem:[#allocation2 + $0x130] ss:$8 sps:$4 sm:$0xff]   ;;  %v2302_v54 = vld [vmem:[#allocation2 + $0x144] ss:$8 sps:$4 sm:$0xff]  }
  0x57   : > { %646 = vmatprep.subr.bf16.mxu0 %v2252_v10  ;;  %1972 = vmatpush3.bf16.msra.mxu1 %v2318_v30  ;;  %v2300_v55 = vld [vmem:[#allocation2 + $0x140] ss:$8 sps:$4 sm:$0xff]   ;;  %v2305_v56 = vld [vmem:[#allocation2 + $0x154] ss:$8 sps:$4 sm:$0xff]   ;;  %v2303_v57 = vld [vmem:[#allocation2 + $0x150] ss:$8 sps:$4 sm:$0xff]  }
  0x58   : > { %1973 = vmatprep.subr.bf16.mxu1 %v2319_v31  ;;  %v2308_v58 = vld [vmem:[#allocation2 + $0x164] ss:$8 sps:$4 sm:$0xff]   ;;  %v2306_v59 = vld [vmem:[#allocation2 + $0x160] ss:$8 sps:$4 sm:$0xff]   ;;  %v2311_v60 = vld [vmem:[#allocation2 + $0x174] ss:$8 sps:$4 sm:$0xff]  }
  0x59   : > { %v2309_v61 = vld [vmem:[#allocation2 + $0x170] ss:$8 sps:$4 sm:$0xff]   ;;  %v2312_v62 = vld [vmem:[%s2607_s9 + $0x8] ss:$12 sps:$4 sm:$0xff]   ;;  %v368_v8 = vld [vmem:[%s2768_s4] sm:$0x3] }
  0x5a   : > { %647 = vmatpush1.bf16.msra.mxu0 %v2254_v11  ;;  %v2324_v63 = vld [vmem:[%s2766_s2 + $0x28] sm:$0xff]   ;;  %v2325_v0 = vld [vmem:[%s2766_s2 + $0x70] sm:$0xff]   ;;  %v2327_v2 = vld [vmem:[%s2766_s2 + $0x78] sm:$0xff]   ;;  %v376_v9 = vsub.s32 1, %v371_v6  ;;  %v373_v10 = vrot.slane %v368_v8, %v372_v7 }
  0x5b   : > { %648 = vmatprep.subr.bf16.mxu0 %v2255_v12  ;;  %1974 = vmatpush3.bf16.msra.mxu1 %v2320_v34  ;;  %v2326_v1 = vld [vmem:[%s2766_s2 + $0x30] sm:$0xff]   ;;  %v2328_v3 = vld [vmem:[%s2766_s2 + $0x38] sm:$0xff]   ;;  %v2329_v26 = vld [vmem:[#allocation4] sm:$0xff]  }
  0x5c   : > { %1975 = vmatprep.subr.bf16.mxu1 %v2321_v35  ;;  %v377_v11 = vrot.slane %v368_v8, %v376_v9  ;;  %v2330_v27 = vld [vmem:[#allocation4 + $0x8] sm:$0xff]   ;;  %v2333_v30 = vld [vmem:[#allocation4 + $0x20] sm:$0xff]   ;;  %v2351_v7 = vld [vmem:[#allocation4 + $0xb0] sm:$0xff]  }
  0x5d   : > { %v2334_v31 = vld [vmem:[#allocation4 + $0x28] sm:$0xff]   ;;  %v1877_v35 = vld [vmem:[%s2769_s5] ss:$0 sm:$0xff]  ;;  %v2352_v8 = vld [vmem:[#allocation4 + $0xb8] sm:$0xff]  }
  0x5e   : > { %649 = vmatpush1.bf16.msra.mxu0 %v2257_v14  ;;  %v2353_v9 = vld [vmem:[#allocation4 + $0xc0] sm:$0xff]  }
  0x5f   : > { %650 = vmatprep.subr.bf16.mxu0 %v2258_v15  ;;  %1976 = vmatpush3.bf16.msra.mxu1 %v2322_v37 }
  0x60   : > { %1977 = vmatprep.subr.bf16.mxu1 %v2323_v39 }
  0x62   : > { %651 = vmatpush1.bf16.msra.mxu0 %v2260_v16 }
  0x63   : > { %652 = vmatprep.subr.bf16.mxu0 %v2261_v17  ;;  %1978 = vmatpush3.bf16.msra.mxu1 %v2324_v63 }
  0x64   : > { %1979 = vmatprep.subr.bf16.mxu1 %v2325_v0 }
  0x66   : > { %653 = vmatpush1.bf16.msra.mxu0 %v2263_v18 }
  0x67   : > { %654 = vmatprep.subr.bf16.mxu0 %v2264_v19  ;;  %1980 = vmatpush3.bf16.msra.mxu1 %v2326_v1 }
  0x68   : > { %1981 = vmatprep.subr.bf16.mxu1 %v2327_v2 }
  0x6a   : > { %655 = vmatpush1.bf16.msra.mxu0 %v2266_v20 }
  0x6b   : > { %656 = vmatprep.subr.bf16.mxu0 %v2267_v21  ;;  %1982 = vmatpush3.bf16.msra.mxu1 %v2328_v3 }
  0x6c   : > { %2052 = vmatprep.subr.bf16.mxu1 %v2472_v4 }
  0x6e   : > { %657 = vmatpush1.bf16.msra.mxu0 %v2269_v24 }
  0x6f   : > { %658 = vmatprep.subr.bf16.mxu0 %v2270_v28  ;;  %v2331_v28 = vld [vmem:[#allocation4 + $0x10] sm:$0xff]  }
  0x72   : > { %659 = vmatpush1.bf16.msra.mxu0 %v2272_v29  ;;  %v2332_v29 = vld [vmem:[#allocation4 + $0x18] sm:$0xff]  }
  0x73   : > { %660 = vmatprep.subr.bf16.mxu0 %v2273_v32  ;;  %v2335_v32 = vld [vmem:[#allocation4 + $0x30] sm:$0xff]  }
  0x76   : > { %661 = vmatpush1.bf16.msra.mxu0 %v2275_v33  ;;  %v2336_v33 = vld [vmem:[#allocation4 + $0x38] sm:$0xff]  }
  0x77   : > { %662 = vmatprep.subr.bf16.mxu0 %v2276_v36 }
  0x7a   : > { %663 = vmatpush1.bf16.msra.mxu0 %v2278_v38 }
  0x7b   : > { %664 = vmatprep.subr.bf16.mxu0 %v2279_v40 }
  0x7e   : > { %665 = vmatpush1.bf16.msra.mxu0 %v2281_v41 }
  0x7f   : > { %666 = vmatprep.subr.bf16.mxu0 %v2282_v42 }
  0x82   : > { %667 = vmatpush1.bf16.msra.mxu0 %v2284_v43 }
  0x83   : > { %679 = vmatprep.subr.bf16.mxu0 %v2290_v44 }
  0x85   : > { %669 = vmatmul.mubr.bf16.vlgmr.msra.gmra.mrb[0].mxu0 %v2285_v45  ;;  %v2337_v45 = vld [vmem:[#allocation4 + $0x40] sm:$0xff]  }
  0x86   : > { %680 = vmatpush1.bf16.msra.mxu0 %v2288_v46  ;;  %711 = vmatprep.mubr.bf16.mxu0 %v2471_v50  ;;  %v2341_v50 = vld [vmem:[#allocation4 + $0x60] sm:$0xff]  }
  0x87   : > { %681 = vmatprep.subr.bf16.mxu0 %v2293_v47  ;;  %v2338_v47 = vld [vmem:[#allocation4 + $0x48] sm:$0xff]  }
  0x8a   : > { %682 = vmatpush1.bf16.msra.mxu0 %v2291_v48  ;;  %v2339_v48 = vld [vmem:[#allocation4 + $0x50] sm:$0xff]  }
  0x8b   : > { %683 = vmatprep.subr.bf16.mxu0 %v2296_v49  ;;  %v2340_v49 = vld [vmem:[#allocation4 + $0x58] sm:$0xff]  }
  0x8e   : > { %684 = vmatpush1.bf16.msra.mxu0 %v2294_v51  ;;  %v2342_v51 = vld [vmem:[#allocation4 + $0x68] sm:$0xff]  }
  0x8f   : > { %685 = vmatprep.subr.bf16.mxu0 %v2299_v52  ;;  %v2343_v52 = vld [vmem:[#allocation4 + $0x70] sm:$0xff]  }
  0x92   : > { %686 = vmatpush1.bf16.msra.mxu0 %v2297_v53  ;;  %v2344_v53 = vld [vmem:[#allocation4 + $0x78] sm:$0xff]  }
  0x93   : > { %687 = vmatprep.subr.bf16.mxu0 %v2302_v54  ;;  %v2345_v54 = vld [vmem:[#allocation4 + $0x80] sm:$0xff]  }
  0x96   : > { %688 = vmatpush1.bf16.msra.mxu0 %v2300_v55  ;;  %v2346_v55 = vld [vmem:[#allocation4 + $0x88] sm:$0xff]  }
  0x97   : > { %689 = vmatprep.subr.bf16.mxu0 %v2305_v56  ;;  %v2347_v56 = vld [vmem:[#allocation4 + $0x90] sm:$0xff]  }
  0x9a   : > { %690 = vmatpush1.bf16.msra.mxu0 %v2303_v57  ;;  %v2348_v57 = vld [vmem:[#allocation4 + $0x98] sm:$0xff]  }
  0x9b   : > { %691 = vmatprep.subr.bf16.mxu0 %v2308_v58  ;;  %v2349_v58 = vld [vmem:[#allocation4 + $0xa0] sm:$0xff]  }
  0x9e   : > { %692 = vmatpush1.bf16.msra.mxu0 %v2306_v59  ;;  %v2350_v59 = vld [vmem:[#allocation4 + $0xa8] sm:$0xff]  }
  0x9f   : > { %693 = vmatprep.subr.bf16.mxu0 %v2311_v60  ;;  %v1894_v60 = vld [vmem:[%s2770_s6] ss:$0 sm:$0xff] }
  0xa2   : > { %694 = vmatpush1.bf16.msra.mxu0 %v2309_v61 }
  0xa3   : > { %2092 = vmatprep.subr.bf16.mxu0 %v2472_v4 }
  0xa5   : > { %712 = vmatmul.mubr.bf16.vlgmr.msra.gmra.mrb[0].mxu0 %v2312_v62 }
  0xa6   : > { %2108 = vmatprep.mubr.msk.bf16.mxu0 %vm2473_vm0, %v2472_v4  ;;  %2093 = vmatpush3.bf16.msra.mxu0 %v2345_v54 }
  0xa7   : > { %2094 = vmatprep.subr.bf16.mxu0 %v2472_v4 }
  0xaa   : > { %2095 = vmatpush3.bf16.msra.mxu0 %v2346_v55 }
  0xab   : > { %2096 = vmatprep.subr.bf16.mxu0 %v2472_v4 }
  0xae   : > { %2097 = vmatpush3.bf16.msra.mxu0 %v2347_v56 }
  0xaf   : > { %2098 = vmatprep.subr.bf16.mxu0 %v2472_v4 }
  0xb2   : > { %2099 = vmatpush3.bf16.msra.mxu0 %v2348_v57 }
  0xb3   : > { %2100 = vmatprep.subr.bf16.mxu0 %v2472_v4 }
  0xb6   : > { %2101 = vmatpush3.bf16.msra.mxu0 %v2349_v58 }
  0xb7   : > { %2102 = vmatprep.subr.bf16.mxu0 %v2472_v4 }
  0xba   : > { %2103 = vmatpush3.bf16.msra.mxu0 %v2350_v59 }
  0xbb   : > { %2104 = vmatprep.subr.bf16.mxu0 %v2472_v4 }
  0xbe   : > { %2105 = vmatpush3.bf16.msra.mxu0 %v2351_v7 }
  0xbf   : > { %2106 = vmatprep.subr.bf16.mxu0 %v2472_v4 }
  0xc2   : > { %2107 = vmatpush3.bf16.msra.mxu0 %v2352_v8 }
  0xc3   : > { %2132 = vmatprep.subr.bf16.mxu0 %v2472_v4 }
 0x178   : > { %v713_v12 = vpop.f32.mrb[0].mxu0 }
 0x179   : > { %v2192_v13 = vadd.f32 %v713_v12, %v373_v10  ;;  %v715_v14 = vpop.f32.mrb[1].mxu0  ;;  %v2356_v12 = vld [vmem:[#allocation4 + $0xd8] sm:$0xff]  }
 0x17a   : > { %v2193_v15 = vadd.f32 %v715_v14, %v377_v11  ;;  %v717_v16 = vpop.f32.mrb[2].mxu0  ;;  %v2358_v14 = vld [vmem:[#allocation4 + $0xe8] sm:$0xff]  }
 0x17b   : > { %v2194_v17 = vadd.f32 %v717_v16, %v373_v10  ;;  %v719_v18 = vpop.f32.mrb[3].mxu0  ;;  %v722_v20 = vmax.f32 %v2192_v13, 0.0  ;;  %v2354_v10 = vld [vmem:[#allocation4 + $0xc8] sm:$0xff]   ;;  %v2357_v13 = vld [vmem:[#allocation4 + $0xe0] sm:$0xff]  }
 0x17c   : > { %v2195_v19 = vadd.f32 %v719_v18, %v377_v11  ;;  %v723_v22 = vmax.f32 %v2193_v15, 0.0  ;;  %v2355_v11 = vld [vmem:[#allocation4 + $0xd0] sm:$0xff]   ;;  %v1904_v15 = vld [vmem:[%s2770_s6 + $0x1] ss:$0 sm:$0xff] }
 0x17d   : > { %v724_v21 = vmax.f32 %v2194_v17, 0.0 }
 0x17e   : > { %v725_v23 = vmax.f32 %v2195_v19, 0.0 }
 0x17f   : > { %v726_v24 = vpack.c.bf16 %v724_v21, %v722_v20 }
 0x180   : > { %v727_v25 = vpack.c.bf16 %v725_v23, %v723_v22 }
 0x182   : > { %895 = vmatprep.mubr.bf16.mxu1 %v727_v25  ;;  %v2359_v25 = vld [vmem:[#allocation4 + $0xf0] sm:$0xff]  }
 0x183   : > { %896 = vmatmul.mubr.bf16.vlgmr.msra.gmra.mrb[0].mxu1 %v726_v24 }
 0x184   : > { %2053 = vmatpush3.bf16.msra.mxu1 %v2329_v26  ;;  %2068 = vmatprep.mubr.msk.bf16.mxu1 %vm2473_vm0, %v2472_v4  ;;  %v2360_v26 = vld [vmem:[#allocation4 + $0xf8] sm:$0xff]  }
 0x185   : > { %2054 = vmatprep.subr.bf16.mxu1 %v2472_v4 }
 0x188   : > { %2055 = vmatpush3.bf16.msra.mxu1 %v2330_v27  ;;  %v2361_v27 = vld [vmem:[#allocation4 + $0x100] sm:$0xff]  }
 0x189   : > { %2056 = vmatprep.subr.bf16.mxu1 %v2472_v4 }
 0x18c   : > { %2057 = vmatpush3.bf16.msra.mxu1 %v2331_v28  ;;  %v2362_v28 = vld [vmem:[#allocation4 + $0x108] sm:$0xff]  }
 0x18d   : > { %2058 = vmatprep.subr.bf16.mxu1 %v2472_v4 }
 0x190   : > { %2059 = vmatpush3.bf16.msra.mxu1 %v2332_v29  ;;  %v2363_v29 = vld [vmem:[#allocation4 + $0x110] sm:$0xff]  }
 0x191   : > { %2060 = vmatprep.subr.bf16.mxu1 %v2472_v4 }
 0x194   : > { %2061 = vmatpush3.bf16.msra.mxu1 %v2333_v30  ;;  %v2364_v30 = vld [vmem:[#allocation4 + $0x118] sm:$0xff]  }
 0x195   : > { %2062 = vmatprep.subr.bf16.mxu1 %v2472_v4 }
 0x198   : > { %2063 = vmatpush3.bf16.msra.mxu1 %v2334_v31  ;;  %v2365_v31 = vld [vmem:[#allocation4 + $0x120] sm:$0xff]  }
 0x199   : > { %2064 = vmatprep.subr.bf16.mxu1 %v2472_v4 }
 0x19c   : > { %2065 = vmatpush3.bf16.msra.mxu1 %v2335_v32  ;;  %v2366_v32 = vld [vmem:[#allocation4 + $0x128] sm:$0xff]  }
 0x19d   : > { %2066 = vmatprep.subr.bf16.mxu1 %v2472_v4 }
 0x1a0   : > { %2067 = vmatpush3.bf16.msra.mxu1 %v2336_v33  ;;  %v1914_v33 = vld [vmem:[%s2770_s6 + $0x2] ss:$0 sm:$0xff] }
 0x1a1   : > { %2072 = vmatprep.subr.bf16.mxu1 %v2472_v4 }
 0x256   : > { %v1983_v34 = vpop.f32.mrb[0].mxu1 }
 0x257   : > { %v1984_v36 = vpop.f32.mrb[1].mxu1 }
 0x258   : > { %v1985_v37 = vadd.f32 %v1984_v36, %v1983_v34  ;;  %v1986_v38 = vpop.f32.mrb[2].mxu1 }
 0x259   : > { %v1987_v39 = vpop.f32.mrb[3].mxu1 }
 0x25a   : > { %v898_v40 = vadd.f32 %v1985_v37, %v1877_v35  ;;  %v1988_v41 = vadd.f32 %v1987_v39, %v1986_v38 }
 0x25c   : > { %v901_v42 = vadd.f32 %v1988_v41, %v1877_v35  ;;  %v904_v43 = vmax.f32 %v898_v40, 0.0 }
 0x25e   : > { %v905_v44 = vmax.f32 %v901_v42, 0.0 }
 0x260   : > { %v906_v46 = vpack.c.bf16 %v905_v44, %v904_v43  ;;  %v2367_v43 = vld [vmem:[#allocation4 + $0x130] sm:$0xff]   ;;  %v2368_v44 = vld [vmem:[#allocation4 + $0x138] sm:$0xff]  }
 0x262   : > { %2069 = vmatmul.mubr.bf16.vlgmr.msra.gmra.mrb[4].mxu1 %v906_v46  ;;  %v2370_v46 = vld [vmem:[#allocation4 + $0x148] sm:$0xff]  }
 0x263   : > { %2073 = vmatpush3.bf16.msra.mxu1 %v2337_v45  ;;  %2088 = vmatprep.mubr.msk.bf16.mxu1 %vm2473_vm0, %v2472_v4  ;;  %v2369_v45 = vld [vmem:[#allocation4 + $0x140] sm:$0xff]  }
 0x264   : > { %2074 = vmatprep.subr.bf16.mxu1 %v2472_v4 }
 0x267   : > { %2075 = vmatpush3.bf16.msra.mxu1 %v2338_v47  ;;  %v2371_v47 = vld [vmem:[#allocation4 + $0x150] sm:$0xff]  }
 0x268   : > { %2076 = vmatprep.subr.bf16.mxu1 %v2472_v4 }
 0x26b   : > { %2077 = vmatpush3.bf16.msra.mxu1 %v2339_v48  ;;  %v2372_v48 = vld [vmem:[#allocation4 + $0x158] sm:$0xff]  }
 0x26c   : > { %2078 = vmatprep.subr.bf16.mxu1 %v2472_v4 }
 0x26f   : > { %2079 = vmatpush3.bf16.msra.mxu1 %v2340_v49  ;;  %v2373_v49 = vld [vmem:[#allocation4 + $0x160] sm:$0xff]  }
 0x270   : > { %2080 = vmatprep.subr.bf16.mxu1 %v2472_v4 }
 0x273   : > { %2081 = vmatpush3.bf16.msra.mxu1 %v2341_v50  ;;  %v2374_v50 = vld [vmem:[#allocation4 + $0x168] sm:$0xff]  }
 0x274   : > { %2082 = vmatprep.subr.bf16.mxu1 %v2472_v4 }
 0x277   : > { %2083 = vmatpush3.bf16.msra.mxu1 %v2342_v51  ;;  %v1924_v51 = vld [vmem:[%s2770_s6 + $0x3] ss:$0 sm:$0xff] }
 0x278   : > { %2084 = vmatprep.subr.bf16.mxu1 %v2472_v4 }
 0x27b   : > { %2085 = vmatpush3.bf16.msra.mxu1 %v2343_v52 }
 0x27c   : > { %2086 = vmatprep.subr.bf16.mxu1 %v2472_v4 }
 0x27f   : > { %2087 = vmatpush3.bf16.msra.mxu1 %v2344_v53 }
 0x280   : > { %2112 = vmatprep.subr.bf16.mxu1 %v2472_v4 }
 0x335   : > { %v1012_v61 = vpop.f32.mrb[4].mxu1 }
 0x336   : > { %v1013_v62 = vadd.f32 %v1894_v60, %v1012_v61  ;;  %v2070_v63 = vpop.f32.mrb[5].mxu1  ;;  %v2375_v61 = vld [vmem:[#allocation4 + $0x170] sm:$0xff]  }
 0x337   : > { %v1015_v0 = vpop.f32.mrb[6].mxu1  ;;  %v2377_v63 = vld [vmem:[#allocation4 + $0x180] sm:$0xff]  }
 0x338   : > { %v1016_v1 = vadd.f32 %v1894_v60, %v1015_v0  ;;  %v2071_v2 = vpop.f32.mrb[7].mxu1  ;;  %v1019_v3 = vmax.f32 %v1013_v62, 0.0  ;;  %v2376_v62 = vld [vmem:[#allocation4 + $0x178] sm:$0xff]   ;;  %v2378_v0 = vld [vmem:[#allocation4 + $0x188] sm:$0xff]  }
 0x339   : > { %v2380_v2 = vld [vmem:[#allocation4 + $0x198] sm:$0xff]  }
 0x33a   : > { %v1020_v5 = vmax.f32 %v1016_v1, 0.0  ;;  %v2379_v1 = vld [vmem:[#allocation4 + $0x190] sm:$0xff]  }
 0x33c   : > { %v1021_v6 = vpack.c.bf16 %v1020_v5, %v1019_v3  ;;  %v2381_v3 = vld [vmem:[#allocation4 + $0x1a0] sm:$0xff]   ;;  %v2382_v5 = vld [vmem:[#allocation4 + $0x1a8] sm:$0xff]  }
 0x33e   : > { %2089 = vmatmul.mubr.bf16.vlgmr.msra.gmra.mrb[8].mxu1 %v1021_v6  ;;  %v1934_v6 = vld [vmem:[%s2770_s6 + $0x4] ss:$0 sm:$0xff] }
 0x33f   : > { %2128 = vmatprep.mubr.msk.bf16.mxu1 %vm2473_vm0, %v2472_v4  ;;  %2113 = vmatpush3.bf16.msra.mxu1 %v2353_v9 }
 0x340   : > { %2114 = vmatprep.subr.bf16.mxu1 %v2472_v4 }
 0x343   : > { %2115 = vmatpush3.bf16.msra.mxu1 %v2354_v10 }
 0x344   : > { %2116 = vmatprep.subr.bf16.mxu1 %v2472_v4 }
 0x347   : > { %2117 = vmatpush3.bf16.msra.mxu1 %v2355_v11 }
 0x348   : > { %2118 = vmatprep.subr.bf16.mxu1 %v2472_v4 }
 0x34b   : > { %2119 = vmatpush3.bf16.msra.mxu1 %v2356_v12 }
 0x34c   : > { %2120 = vmatprep.subr.bf16.mxu1 %v2472_v4 }
 0x34f   : > { %2121 = vmatpush3.bf16.msra.mxu1 %v2357_v13 }
 0x350   : > { %2122 = vmatprep.subr.bf16.mxu1 %v2472_v4 }
 0x353   : > { %2123 = vmatpush3.bf16.msra.mxu1 %v2358_v14 }
 0x354   : > { %2124 = vmatprep.subr.bf16.mxu1 %v2472_v4 }
 0x357   : > { %2125 = vmatpush3.bf16.msra.mxu1 %v2359_v25 }
 0x358   : > { %2126 = vmatprep.subr.bf16.mxu1 %v2472_v4 }
 0x35b   : > { %2127 = vmatpush3.bf16.msra.mxu1 %v2360_v26 }
 0x35c   : > { %2152 = vmatprep.subr.bf16.mxu1 %v2472_v4 }
 0x411   : > { %v1129_v16 = vpop.f32.mrb[8].mxu1 }
 0x412   : > { %v1130_v17 = vadd.f32 %v1904_v15, %v1129_v16  ;;  %v2090_v18 = vpop.f32.mrb[9].mxu1  ;;  %v2383_v16 = vld [vmem:[#allocation4 + $0x1b0] sm:$0xff]  }
 0x413   : > { %v1132_v19 = vpop.f32.mrb[10].mxu1  ;;  %v1944_v18 = vld [vmem:[%s2770_s6 + $0x5] ss:$0 sm:$0xff] }
 0x414   : > { %v1133_v20 = vadd.f32 %v1904_v15, %v1132_v19  ;;  %v2091_v21 = vpop.f32.mrb[11].mxu1  ;;  %v1136_v22 = vmax.f32 %v1130_v17, 0.0  ;;  %v2384_v17 = vld [vmem:[#allocation4 + $0x1b8] sm:$0xff]  }
 0x416   : > { %v1137_v23 = vmax.f32 %v1133_v20, 0.0 }
 0x418   : > { %v1138_v24 = vpack.c.bf16 %v1137_v23, %v1136_v22 }
 0x41a   : > { %2109 = vmatmul.mubr.bf16.vlgmr.msra.gmra.mrb[4].mxu0 %v1138_v24 }
 0x41b   : > { %2148 = vmatprep.mubr.msk.bf16.mxu0 %vm2473_vm0, %v2472_v4  ;;  %2133 = vmatpush3.bf16.msra.mxu0 %v2361_v27 }
 0x41c   : > { %2134 = vmatprep.subr.bf16.mxu0 %v2472_v4 }
 0x41f   : > { %2135 = vmatpush3.bf16.msra.mxu0 %v2362_v28 }
 0x420   : > { %2136 = vmatprep.subr.bf16.mxu0 %v2472_v4 }
 0x423   : > { %2137 = vmatpush3.bf16.msra.mxu0 %v2363_v29 }
 0x424   : > { %2138 = vmatprep.subr.bf16.mxu0 %v2472_v4 }
 0x427   : > { %2139 = vmatpush3.bf16.msra.mxu0 %v2364_v30 }
 0x428   : > { %2140 = vmatprep.subr.bf16.mxu0 %v2472_v4 }
 0x42b   : > { %2141 = vmatpush3.bf16.msra.mxu0 %v2365_v31 }
 0x42c   : > { %2142 = vmatprep.subr.bf16.mxu0 %v2472_v4 }
 0x42f   : > { %2143 = vmatpush3.bf16.msra.mxu0 %v2366_v32 }
 0x430   : > { %2144 = vmatprep.subr.bf16.mxu0 %v2472_v4 }
 0x433   : > { %2145 = vmatpush3.bf16.msra.mxu0 %v2367_v43 }
 0x434   : > { %2146 = vmatprep.subr.bf16.mxu0 %v2472_v4 }
 0x437   : > { %2147 = vmatpush3.bf16.msra.mxu0 %v2368_v44 }
 0x438   : > { %2172 = vmatprep.subr.bf16.mxu0 %v2472_v4 }
 0x4ed   : > { %v1246_v34 = vpop.f32.mrb[4].mxu0 }
 0x4ee   : > { %v1247_v35 = vadd.f32 %v1914_v33, %v1246_v34  ;;  %v2110_v36 = vpop.f32.mrb[5].mxu0 }
 0x4ef   : > { %v1249_v37 = vpop.f32.mrb[6].mxu0 }
 0x4f0   : > { %v1250_v38 = vadd.f32 %v1914_v33, %v1249_v37  ;;  %v2111_v39 = vpop.f32.mrb[7].mxu0  ;;  %v1253_v40 = vmax.f32 %v1247_v35, 0.0 }
 0x4f2   : > { %v1254_v41 = vmax.f32 %v1250_v38, 0.0 }
 0x4f4   : > { %v1255_v42 = vpack.c.bf16 %v1254_v41, %v1253_v40 }
 0x4f6   : > { %2129 = vmatmul.mubr.bf16.vlgmr.msra.gmra.mrb[12].mxu1 %v1255_v42 }
 0x4f7   : > { %2168 = vmatprep.mubr.msk.bf16.mxu1 %vm2473_vm0, %v2472_v4  ;;  %2153 = vmatpush3.bf16.msra.mxu1 %v2369_v45 }
 0x4f8   : > { %2154 = vmatprep.subr.bf16.mxu1 %v2472_v4 }
 0x4fb   : > { %2155 = vmatpush3.bf16.msra.mxu1 %v2370_v46 }
 0x4fc   : > { %2156 = vmatprep.subr.bf16.mxu1 %v2472_v4 }
 0x4ff   : > { %2157 = vmatpush3.bf16.msra.mxu1 %v2371_v47 }
 0x500   : > { %2158 = vmatprep.subr.bf16.mxu1 %v2472_v4 }
 0x503   : > { %2159 = vmatpush3.bf16.msra.mxu1 %v2372_v48 }
 0x504   : > { %2160 = vmatprep.subr.bf16.mxu1 %v2472_v4 }
 0x507   : > { %2161 = vmatpush3.bf16.msra.mxu1 %v2373_v49 }
 0x508   : > { %2162 = vmatprep.subr.bf16.mxu1 %v2472_v4 }
 0x50b   : > { %2163 = vmatpush3.bf16.msra.mxu1 %v2374_v50 }
 0x50c   : > { %2164 = vmatprep.subr.bf16.mxu1 %v2472_v4 }
 0x50f   : > { %2165 = vmatpush3.bf16.msra.mxu1 %v2375_v61 }
 0x510   : > { %2166 = vmatprep.subr.bf16.mxu1 %v2472_v4 }
 0x513   : > { %2167 = vmatpush3.bf16.msra.mxu1 %v2376_v62 }
 0x5c9   : > { %v1363_v52 = vpop.f32.mrb[12].mxu1 }
 0x5ca   : > { %v1364_v53 = vadd.f32 %v1924_v51, %v1363_v52  ;;  %v2130_v54 = vpop.f32.mrb[13].mxu1 }
 0x5cb   : > { %v1366_v55 = vpop.f32.mrb[14].mxu1 }
 0x5cc   : > { %v1367_v56 = vadd.f32 %v1924_v51, %v1366_v55  ;;  %v2131_v57 = vpop.f32.mrb[15].mxu1  ;;  %v1370_v58 = vmax.f32 %v1364_v53, 0.0 }
 0x5ce   : > { %v1371_v59 = vmax.f32 %v1367_v56, 0.0 }
 0x5d0   : > { %v1372_v60 = vpack.c.bf16 %v1371_v59, %v1370_v58 }
 0x5d2   : > { %2149 = vmatmul.mubr.bf16.vlgmr.msra.gmra.mrb[8].mxu0 %v1372_v60 }
 0x5d3   : > { %2188 = vmatprep.mubr.msk.bf16.mxu0 %vm2473_vm0, %v2472_v4  ;;  %2173 = vmatpush3.bf16.msra.mxu0 %v2377_v63 }
 0x5d4   : > { %2174 = vmatprep.subr.bf16.mxu0 %v2472_v4 }
 0x5d7   : > { %2175 = vmatpush3.bf16.msra.mxu0 %v2378_v0 }
 0x5d8   : > { %2176 = vmatprep.subr.bf16.mxu0 %v2472_v4 }
 0x5db   : > { %2177 = vmatpush3.bf16.msra.mxu0 %v2379_v1 }
 0x5dc   : > { %2178 = vmatprep.subr.bf16.mxu0 %v2472_v4 }
 0x5df   : > { %2179 = vmatpush3.bf16.msra.mxu0 %v2380_v2 }
 0x5e0   : > { %2180 = vmatprep.subr.bf16.mxu0 %v2472_v4 }
 0x5e3   : > { %2181 = vmatpush3.bf16.msra.mxu0 %v2381_v3 }
 0x5e4   : > { %2182 = vmatprep.subr.bf16.mxu0 %v2472_v4 }
 0x5e7   : > { %2183 = vmatpush3.bf16.msra.mxu0 %v2382_v5 }
 0x5e8   : > { %2184 = vmatprep.subr.bf16.mxu0 %v2472_v4 }
 0x5eb   : > { %2185 = vmatpush3.bf16.msra.mxu0 %v2383_v16 }
 0x5ec   : > { %2186 = vmatprep.subr.bf16.mxu0 %v2472_v4  ;;  %v1954_v4 = vld [vmem:[%s2770_s6 + $0x6] ss:$0 sm:$0xff] }
 0x5ef   : > { %2187 = vmatpush3.bf16.msra.mxu0 %v2384_v17 }
 0x6a5   : > { %v1480_v7 = vpop.f32.mrb[8].mxu0 }
 0x6a6   : > { %v1481_v8 = vadd.f32 %v1934_v6, %v1480_v7  ;;  %v2150_v9 = vpop.f32.mrb[9].mxu0 }
 0x6a7   : > { %v1483_v10 = vpop.f32.mrb[10].mxu0 }
 0x6a8   : > { %v1484_v11 = vadd.f32 %v1934_v6, %v1483_v10  ;;  %v2151_v12 = vpop.f32.mrb[11].mxu0  ;;  %v1487_v13 = vmax.f32 %v1481_v8, 0.0 }
 0x6aa   : > { %v1488_v14 = vmax.f32 %v1484_v11, 0.0 }
 0x6ac   : > { %v1489_v15 = vpack.c.bf16 %v1488_v14, %v1487_v13 }
 0x6ae   : > { %2169 = vmatmul.mubr.bf16.vlgmr.msra.gmra.mrb[16].mxu1 %v1489_v15 }
 0x781   : > { %v1597_v19 = vpop.f32.mrb[16].mxu1 }
 0x782   : > { %v1598_v20 = vadd.f32 %v1944_v18, %v1597_v19  ;;  %v2170_v21 = vpop.f32.mrb[17].mxu1 }
 0x783   : > { %v1600_v22 = vpop.f32.mrb[18].mxu1 }
 0x784   : > { %v1601_v23 = vadd.f32 %v1944_v18, %v1600_v22  ;;  %v2171_v24 = vpop.f32.mrb[19].mxu1  ;;  %v1604_v25 = vmax.f32 %v1598_v20, 0.0 }
 0x786   : > { %v1605_v26 = vmax.f32 %v1601_v23, 0.0 }
 0x788   : > { %v1606_v27 = vpack.c.bf16 %v1605_v26, %v1604_v25 }
 0x78a   : > { %2189 = vmatmul.mubr.bf16.vlgmr.msra.gmra.mrb[12].mxu0 %v1606_v27 }
 0x85d   : > { %v1714_v28 = vpop.f32.mrb[12].mxu0 }
 0x85e   : > { %v1715_v29 = vadd.f32 %v1954_v4, %v1714_v28  ;;  %v2190_v30 = vpop.f32.mrb[13].mxu0 }
 0x85f   : > { %v1717_v31 = vpop.f32.mrb[14].mxu0 }
 0x860   : > { %v1963_v32 = vmul.f32 -1.442695, %v1715_v29  ;;  %v1718_v33 = vadd.f32 %v1954_v4, %v1717_v31  ;;  %v2191_v34 = vpop.f32.mrb[15].mxu0 }
 0x862   : > { %2385 = vpow2.f32 %v1963_v32  ;;  %v1964_v35 = vmul.f32 -1.442695, %v1718_v33 }
 0x864   : > { %2387 = vpow2.f32 %v1964_v35 }
 0x86c   : > { %v2386_v36 = vpop.eup %2385 }
 0x86d   : > { %v1727_v37 = vadd.f32 1.0, %v2386_v36 }
 0x86e   : > { %v2388_v38 = vpop.eup %2387 }
 0x86f   : > { %2389 = vrcp.f32 %v1727_v37  ;;  %v1728_v39 = vadd.f32 1.0, %v2388_v38 }
 0x871   : > { %2391 = vrcp.f32 %v1728_v39 }
 0x879   : > { %v2390_v40 = vpop.eup %2389 }
 0x87a   : > { %1733 = vst [vmem:[%s313_s12] sm:$0xff] %v2390_v40 }
 0x87b   : > { %v2392_v41 = vpop.eup %2391 }
 0x87c   : > { %1734 = vst [vmem:[%s313_s12 + $0x8] sm:$0xff] %v2392_v41 }
 0x87d PF: > { %s19_s24 = sadd.s32 1, %s2463_s24  }
 0x87e   : > { %p16_p2 = scmp.ge.s32.totalorder %s19_s24, 4  }
 0x880   :  { %18 = sbr.rel (!%p16_p2) target bundleno = 2 (0x2), region = 99 }
 0x887   :  { %1757 = vsyncpa [#allocation3], 1 }
 0x888   :  { %1759 = vsyncpa [#allocation3 + $0x1], 1 }
 0x889   :  { %1760 = vsyncpa [#allocation5], 1 }

</bundles_post_ra>
